<compile_context>
chip_gen: v7x
topology: tpu7x:2x2x1
jax: 0.10.0
libtpu: 0.0.40
codegen_flags: <defaults>
</compile_context>

<pallas_src>
import functools

import jax
import jax.numpy as jnp
from jax.experimental import pallas as pl
from jax.experimental.pallas import tpu as pltpu

IGNORE_INDEX = -100

_LANES = 128
_MAX_ROW_TILE = 1024
_C_TILE = 2048            # class-axis tile when full-C blocks don't fit well
_MIN_FULL_C_ROWS = 64     # switch to C-tiling below this full-C row tile
_FALLBACK_VMEM_CAPACITY = 64 * 1024 * 1024   # v7x-sized; safe on every part


def _round_up(x: int, m: int) -> int:
    return (x + m - 1) // m * m


def _vmem_capacity_bytes() -> int:
    try:
        return int(getattr(pltpu.get_tpu_info(), "vmem_capacity_bytes",
                           _FALLBACK_VMEM_CAPACITY))
    except Exception:
        return _FALLBACK_VMEM_CAPACITY


def _row_tile_for(n_rows: int, c_tile: int, itemsize: int,
                  budget: int, sub: int) -> int:
    """Largest row tile whose working set fits the VMEM budget."""
    per_row = 2 * c_tile * itemsize        # double-buffered logits block
    per_row += (8 + itemsize) * c_tile     # f32 exp temp + i32 iota + native select temp
    per_row += 2 * _LANES * 4              # (rt,1) int32 labels lane-pad to 128, dbl-buffered
    per_row += 4 * 4                       # f32 running max / exp-sum / target rows
    rt = budget // max(per_row, 1)
    rt = (rt // sub) * sub
    return max(sub, min(_MAX_ROW_TILE, rt, _round_up(n_rows, sub)))


def _seq_ce_kernel(logits_ref, labels_ref, sum_ref, cnt_ref,
                   m_sc, l_sc, t_sc, *,
                   n_rows, row_tile, n_classes, c_tile):
    """Grid point (i, j): row tile i ('parallel'), class tile j ('arbitrary').

    Online logsumexp + on-the-fly target-logit accumulation across j; on the
    last class tile the per-row losses are masked and reduced into this row
    tile's lane-dense (1, 1, 128) partial-sum / count output blocks.
    """
    i = pl.program_id(0)
    j = pl.program_id(1)
    last_j = pl.num_programs(1) - 1

    @pl.when(j == 0)
    def _init():
        m_sc[...] = jnp.full_like(m_sc, -jnp.inf)
        l_sc[...] = jnp.zeros_like(l_sc)
        t_sc[...] = jnp.zeros_like(t_sc)

    x = logits_ref[...]                       # (RT, CT) in native dtype (bf16 stays bf16)
    lbl = labels_ref[...]                     # (RT, 1) int32

    # Local class indices; labels are shifted into this C-tile's frame so the
    # iota itself is j-independent.
    cls = jax.lax.broadcasted_iota(jnp.int32, x.shape, 1)
    lbl_local = lbl - j * c_tile

    # Columns past C only exist when the last class tile is partial (static
    # trace-time branch -> zero cost otherwise).  Mask them with -inf so they
    # vanish from both the max and the exp-sum.
    if n_classes % c_tile != 0:
        col_ok = cls < (n_classes - j * c_tile)
        xm = jnp.where(col_ok, x, jnp.array(-jnp.inf, x.dtype))
    else:
        xm = x

    # Online logsumexp: max in native dtype (exact), exp/accumulate in f32.
    m_blk = jnp.max(xm, axis=-1, keepdims=True).astype(jnp.float32)
    m_new = jnp.maximum(m_sc[...], m_blk)
    e = jnp.exp(xm.astype(jnp.float32) - m_new)      # masked cols -> exp(-inf) = 0
    l_sc[...] = l_sc[...] * jnp.exp(m_sc[...] - m_new) + jnp.sum(
        e, axis=-1, keepdims=True)
    m_sc[...] = m_new

    # Label-logit gather via one-hot compare in native dtype.  Exactly one
    # class tile contributes per row; ignore_index (-100) never matches since
    # cls >= 0, so ignored rows accumulate 0.
    sel = jnp.where(cls == lbl_local, x, jnp.array(0, x.dtype))
    t_sc[...] += jnp.sum(sel, axis=-1, keepdims=True).astype(jnp.float32)

    @pl.when(j == last_j)
    def _finalize():
        # Valid-row mask: not ignore_index AND inside the un-padded row range.
        # NOTE: every reduction above is per-row (class axis only), so NaN/Inf
        # garbage in tail rows cannot leak into valid rows; it is zeroed here
        # by the select.
        row = jax.lax.broadcasted_iota(jnp.int32, lbl.shape, 0) + i * row_tile
        valid = (lbl != IGNORE_INDEX) & (row < n_rows)
        lse = jnp.log(l_sc[...]) + m_sc[...]
        per_row = jnp.where(valid, lse - t_sc[...], 0.0)
        sum_ref[...] = jnp.full(sum_ref.shape, jnp.sum(per_row), jnp.float32)
        cnt_ref[...] = jnp.full(cnt_ref.shape,
                                jnp.sum(valid.astype(jnp.float32)), jnp.float32)


@functools.partial(jax.jit, static_argnames=("c_tile_override",))
def seq_loss(outputs: jax.Array, labels: jax.Array,
             c_tile_override: int | None = None) -> jax.Array:
    """SeqLoss.forward: rearrange (b s c)->((b s) c), (b s)->((b s)), apply CE."""
    B, S, C = outputs.shape
    N = B * S
    itemsize = jnp.dtype(outputs.dtype).itemsize
    sub = max(8, 32 // itemsize)          # sublane multiple: f32->8, bf16->16, i8->32

    cap = _vmem_capacity_bytes()
    budget = max((cap * 3) // 8, 4 * 1024 * 1024)
    vmem_limit = max(min((cap * 3) // 4, cap - (8 << 20)), 16 * 1024 * 1024)

    # Class-axis tiling: keep full C when a decent row tile fits the budget,
    # otherwise tile C (online logsumexp) so the row tile stays large.
    if c_tile_override is not None:
        ct = int(c_tile_override)
        if ct < C:
            assert ct % _LANES == 0, "c_tile_override must be a multiple of 128"
        else:
            ct = C
    else:
        ct = C
        if _row_tile_for(N, C, itemsize, budget, sub) < _MIN_FULL_C_ROWS and C > _C_TILE:
            ct = _C_TILE
    rt = _row_tile_for(N, ct, itemsize, budget, sub)

    num_row_tiles = pl.cdiv(N, rt)
    # v7x megacore: keep >= 2 row tiles so the 'parallel' axis can split
    # across both TensorCores.
    if num_row_tiles == 1 and rt >= 2 * sub:
        rt_half = _round_up(pl.cdiv(N, 2), sub)
        if pl.cdiv(N, rt_half) >= 2:
            rt = rt_half
            num_row_tiles = pl.cdiv(N, rt)
    num_c_tiles = pl.cdiv(C, ct)

    logits = outputs.reshape(N, C)                  # keep HBM dtype (bf16 stays bf16)
    lbls = labels.reshape(N, 1).astype(jnp.int32)

    kernel = functools.partial(_seq_ce_kernel, n_rows=N, row_tile=rt,
                               n_classes=C, c_tile=ct)

    cost = pl.CostEstimate(
        flops=6 * N * C,
        transcendentals=N * C,
        bytes_accessed=N * C * itemsize + N * 4 + 2 * num_row_tiles * _LANES * 4,
    )

    psum, pcnt = pl.pallas_call(
        kernel,
        out_shape=(
            jax.ShapeDtypeStruct((num_row_tiles, 1, _LANES), jnp.float32),
            jax.ShapeDtypeStruct((num_row_tiles, 1, _LANES), jnp.float32),
        ),
        grid_spec=pltpu.PrefetchScalarGridSpec(
            num_scalar_prefetch=0,
            grid=(num_row_tiles, num_c_tiles),
            in_specs=[
                pl.BlockSpec((rt, ct), lambda i, j: (i, j)),
                pl.BlockSpec((rt, 1), lambda i, j: (i, 0)),
            ],
            out_specs=[
                pl.BlockSpec((1, 1, _LANES), lambda i, j: (i, 0, 0)),
                pl.BlockSpec((1, 1, _LANES), lambda i, j: (i, 0, 0)),
            ],
            scratch_shapes=[
                pltpu.VMEM((rt, 1), jnp.float32),   # running max
                pltpu.VMEM((rt, 1), jnp.float32),   # running exp-sum
                pltpu.VMEM((rt, 1), jnp.float32),   # target logit
            ],
        ),
        compiler_params=pltpu.CompilerParams(
            dimension_semantics=("parallel", "arbitrary"),
            vmem_limit_bytes=vmem_limit,
        ),
        cost_estimate=cost,
    )(logits, lbls)

    # 'mean' reduction over non-ignored rows (matches PyTorch CE default).
    # If every label is ignore_index this is 0/0 -> NaN, same as PyTorch.
    loss_sum = jnp.sum(psum[:, 0, 0])
    valid_cnt = jnp.sum(pcnt[:, 0, 0])
    return (loss_sum / valid_cnt).astype(jnp.float32)


def _reference_seq_loss(outputs, labels):
    """Pure-JAX reference of SeqLoss(CrossEntropyLoss())."""
    B, S, C = outputs.shape
    x = outputs.reshape(B * S, C).astype(jnp.float32)
    y = labels.reshape(B * S).astype(jnp.int32)
    lse = jax.scipy.special.logsumexp(x, axis=-1)
    tgt = jnp.take_along_axis(x, jnp.clip(y, 0, C - 1)[:, None], axis=-1)[:, 0]
    valid = y != IGNORE_INDEX
    per_row = jnp.where(valid, lse - tgt, 0.0)
    return jnp.sum(per_row) / jnp.sum(valid.astype(jnp.float32))


if __name__ == "__main__":
    key = jax.random.PRNGKey(0)
    ks = jax.random.split(key, 10)

    # Case 1: small f32, shapes consistent with the module (b=2, s=8, c=32).
    B, S, C = 2, 8, 32
    outputs = jax.random.normal(ks[0], (B, S, C), dtype=jnp.float32)
    labels = jax.random.randint(ks[1], (B, S), 0, C, dtype=jnp.int32)
    labels = labels.at[0, 3].set(IGNORE_INDEX).at[1, 7].set(IGNORE_INDEX)
    loss = seq_loss(outputs, labels)
    jax.block_until_ready(loss)
    ref = _reference_seq_loss(outputs, labels)
    assert jnp.allclose(loss, ref, atol=1e-5, rtol=1e-5), (loss, ref)

    # Case 2: row count not a multiple of the tile -> in-kernel tail masking.
    B2, S2, C2 = 3, 5, 48
    outputs2 = jax.random.normal(ks[2], (B2, S2, C2), dtype=jnp.float32)
    labels2 = jax.random.randint(ks[3], (B2, S2), 0, C2, dtype=jnp.int32)
    labels2 = labels2.at[1, 2].set(IGNORE_INDEX)
    loss2 = seq_loss(outputs2, labels2)
    jax.block_until_ready(loss2)
    ref2 = _reference_seq_loss(outputs2, labels2)
    assert jnp.allclose(loss2, ref2, atol=1e-5, rtol=1e-5), (loss2, ref2)

    # Case 3: bf16 logits -> native-dtype max/compare/select fast path.
    B3, S3, C3 = 2, 16, 256
    outputs3 = jax.random.normal(ks[4], (B3, S3, C3), dtype=jnp.bfloat16)
    labels3 = jax.random.randint(ks[5], (B3, S3), 0, C3, dtype=jnp.int32)
    labels3 = labels3.at[0, 0].set(IGNORE_INDEX)
    loss3 = seq_loss(outputs3, labels3)
    jax.block_until_ready(loss3)
    ref3 = _reference_seq_loss(outputs3, labels3)
    assert jnp.allclose(loss3, ref3, atol=1e-3, rtol=1e-3), (loss3, ref3)

    # Case 4: forced class tiling with a partial last C tile (416 % 128 != 0)
    # -> exercises online logsumexp + column masking.
    B4, S4, C4 = 2, 8, 416
    outputs4 = jax.random.normal(ks[6], (B4, S4, C4), dtype=jnp.float32)
    labels4 = jax.random.randint(ks[7], (B4, S4), 0, C4, dtype=jnp.int32)
    labels4 = labels4.at[1, 5].set(IGNORE_INDEX)
    loss4 = seq_loss(outputs4, labels4, c_tile_override=128)
    jax.block_until_ready(loss4)
    ref4 = _reference_seq_loss(outputs4, labels4)
    assert jnp.allclose(loss4, ref4, atol=1e-5, rtol=1e-5), (loss4, ref4)

    # Case 5: forced class tiling with an exact split (384 = 3 * 128)
    # -> exercises the online logsumexp path without column masking.
    B5, S5, C5 = 2, 8, 384
    outputs5 = jax.random.normal(ks[8], (B5, S5, C5), dtype=jnp.float32)
    labels5 = jax.random.randint(ks[9], (B5, S5), 0, C5, dtype=jnp.int32)
    loss5 = seq_loss(outputs5, labels5, c_tile_override=128)
    jax.block_until_ready(loss5)
    ref5 = _reference_seq_loss(outputs5, labels5)
    assert jnp.allclose(loss5, ref5, atol=1e-5, rtol=1e-5), (loss5, ref5)

    print("KERNEL_OK")
</pallas_src>

<mosaic_0001>
module attributes {stable_mosaic.version = 11 : i64} {
  func.func @_seq_ce_kernel(%arg0: i32, %arg1: i32, %arg2: memref<8x32xf32, #tpu.memory_space<vmem>>, %arg3: memref<8x1xi32, #tpu.memory_space<vmem>>, %arg4: memref<1x1x128xf32, #tpu.memory_space<vmem>>, %arg5: memref<1x1x128xf32, #tpu.memory_space<vmem>>, %arg6: memref<8x1xf32, #tpu.memory_space<vmem>>, %arg7: memref<8x1xf32, #tpu.memory_space<vmem>>, %arg8: memref<8x1xf32, #tpu.memory_space<vmem>>) attributes {dimension_semantics = [#tpu.dimension_semantics<parallel>, #tpu.dimension_semantics<arbitrary>], iteration_bounds = array<i64: 2, 1>, scalar_prefetch = 0 : i64, scratch_operands = 3 : i64, tpu.core_type = #tpu.core_type<tc>, window_params = [{transform_indices = @transform_0, window_bounds = array<i64: 8, 32>}, {transform_indices = @transform_1, window_bounds = array<i64: 8, 1>}, {transform_indices = @transform_2, window_bounds = array<i64: 1, 1, 128>}, {transform_indices = @transform_3, window_bounds = array<i64: 1, 1, 128>}]} {
    %c0_i32 = arith.constant 0 : i32
    %0 = arith.cmpi eq, %arg1, %c0_i32 : i32
    %1 = arith.extui %0 : i1 to i32
    %c0_i32_0 = arith.constant 0 : i32
    %2 = arith.cmpi ne, %1, %c0_i32_0 : i32
    scf.if %2 {
      %cst_23 = arith.constant 0xFF800000 : f32
      %38 = vector.broadcast %cst_23 : f32 to vector<8x1xf32>
      %c0_24 = arith.constant 0 : index
      %c0_25 = arith.constant 0 : index
      %39 = vector.load %arg6[%c0_24, %c0_25] : memref<8x1xf32, #tpu.memory_space<vmem>>, vector<8x1xf32>
      tpu.vector_store %arg6[%c0_24, %c0_25], %38 {strides = array<i32>} : memref<8x1xf32, #tpu.memory_space<vmem>>, vector<8x1xf32>,
      %cst_26 = arith.constant 0.000000e+00 : f32
      %40 = vector.broadcast %cst_26 : f32 to vector<8x1xf32>
      %c0_27 = arith.constant 0 : index
      %c0_28 = arith.constant 0 : index
      %41 = vector.load %arg7[%c0_27, %c0_28] : memref<8x1xf32, #tpu.memory_space<vmem>>, vector<8x1xf32>
      tpu.vector_store %arg7[%c0_27, %c0_28], %40 {strides = array<i32>} : memref<8x1xf32, #tpu.memory_space<vmem>>, vector<8x1xf32>,
      %cst_29 = arith.constant 0.000000e+00 : f32
      %42 = vector.broadcast %cst_29 : f32 to vector<8x1xf32>
      %c0_30 = arith.constant 0 : index
      %c0_31 = arith.constant 0 : index
      %43 = vector.load %arg8[%c0_30, %c0_31] : memref<8x1xf32, #tpu.memory_space<vmem>>, vector<8x1xf32>
      tpu.vector_store %arg8[%c0_30, %c0_31], %42 {strides = array<i32>} : memref<8x1xf32, #tpu.memory_space<vmem>>, vector<8x1xf32>,
    } else {
    }
    %c0 = arith.constant 0 : index
    %c0_1 = arith.constant 0 : index
    %3 = vector.load %arg2[%c0, %c0_1] : memref<8x32xf32, #tpu.memory_space<vmem>>, vector<8x32xf32>
    %c0_2 = arith.constant 0 : index
    %c0_3 = arith.constant 0 : index
    %4 = vector.load %arg3[%c0_2, %c0_3] : memref<8x1xi32, #tpu.memory_space<vmem>>, vector<8x1xi32>
    %5 = tpu.iota {dimensions = array<i32: 1>} : vector<8x32xi32>
    %c32_i32 = arith.constant 32 : i32
    %6 = arith.muli %arg1, %c32_i32 : i32
    %7 = vector.broadcast %6 : i32 to vector<8x1xi32>
    %8 = arith.subi %4, %7 : vector<8x1xi32>
    %cst = arith.constant dense<0xFF800000> : vector<8xf32>
    %9 = vector.multi_reduction <maximumf>, %3, %cst [1] : vector<8x32xf32> to vector<8xf32>
    %10 = vector.shape_cast %9 : vector<8xf32> to vector<8x1xf32>
    %c0_4 = arith.constant 0 : index
    %c0_5 = arith.constant 0 : index
    %11 = vector.load %arg6[%c0_4, %c0_5] : memref<8x1xf32, #tpu.memory_space<vmem>>, vector<8x1xf32>
    %12 = arith.maximumf %11, %10 : vector<8x1xf32>
    %13 = vector.broadcast %12 : vector<8x1xf32> to vector<8x32xf32>
    %14 = arith.subf %3, %13 : vector<8x32xf32>
    %15 = math.exp %14 : vector<8x32xf32>
    %c0_6 = arith.constant 0 : index
    %c0_7 = arith.constant 0 : index
    %16 = vector.load %arg7[%c0_6, %c0_7] : memref<8x1xf32, #tpu.memory_space<vmem>>, vector<8x1xf32>
    %c0_8 = arith.constant 0 : index
    %c0_9 = arith.constant 0 : index
    %17 = vector.load %arg6[%c0_8, %c0_9] : memref<8x1xf32, #tpu.memory_space<vmem>>, vector<8x1xf32>
    %18 = arith.subf %17, %12 : vector<8x1xf32>
    %19 = math.exp %18 : vector<8x1xf32>
    %20 = arith.mulf %16, %19 : vector<8x1xf32>
    %cst_10 = arith.constant dense<0.000000e+00> : vector<8xf32>
    %21 = vector.multi_reduction <add>, %15, %cst_10 [1] : vector<8x32xf32> to vector<8xf32>
    %22 = vector.shape_cast %21 : vector<8xf32> to vector<8x1xf32>
    %23 = arith.addf %20, %22 : vector<8x1xf32>
    %c0_11 = arith.constant 0 : index
    %c0_12 = arith.constant 0 : index
    %24 = vector.load %arg7[%c0_11, %c0_12] : memref<8x1xf32, #tpu.memory_space<vmem>>, vector<8x1xf32>
    tpu.vector_store %arg7[%c0_11, %c0_12], %23 {strides = array<i32>} : memref<8x1xf32, #tpu.memory_space<vmem>>, vector<8x1xf32>,
    %c0_13 = arith.constant 0 : index
    %c0_14 = arith.constant 0 : index
    %25 = vector.load %arg6[%c0_13, %c0_14] : memref<8x1xf32, #tpu.memory_space<vmem>>, vector<8x1xf32>
    tpu.vector_store %arg6[%c0_13, %c0_14], %12 {strides = array<i32>} : memref<8x1xf32, #tpu.memory_space<vmem>>, vector<8x1xf32>,
    %26 = vector.broadcast %8 : vector<8x1xi32> to vector<8x32xi32>
    %27 = arith.cmpi eq, %5, %26 : vector<8x32xi32>
    %cst_15 = arith.constant 0.000000e+00 : f32
    %28 = vector.broadcast %cst_15 : f32 to vector<8x32xf32>
    %29 = arith.select %27, %3, %28 : vector<8x32xi1>, vector<8x32xf32>
    %c0_16 = arith.constant 0 : index
    %c0_17 = arith.constant 0 : index
    %30 = vector.load %arg8[%c0_16, %c0_17] : memref<8x1xf32, #tpu.memory_space<vmem>>, vector<8x1xf32>
    %cst_18 = arith.constant dense<0.000000e+00> : vector<8xf32>
    %31 = vector.multi_reduction <add>, %29, %cst_18 [1] : vector<8x32xf32> to vector<8xf32>
    %32 = vector.shape_cast %31 : vector<8xf32> to vector<8x1xf32>
    %33 = arith.addf %30, %32 : vector<8x1xf32>
    %c0_19 = arith.constant 0 : index
    %c0_20 = arith.constant 0 : index
    %34 = vector.load %arg8[%c0_19, %c0_20] : memref<8x1xf32, #tpu.memory_space<vmem>>, vector<8x1xf32>
    tpu.vector_store %arg8[%c0_19, %c0_20], %33 {strides = array<i32>} : memref<8x1xf32, #tpu.memory_space<vmem>>, vector<8x1xf32>,
    %c0_i32_21 = arith.constant 0 : i32
    %35 = arith.cmpi eq, %arg1, %c0_i32_21 : i32
    %36 = arith.extui %35 : i1 to i32
    %c0_i32_22 = arith.constant 0 : i32
    %37 = arith.cmpi ne, %36, %c0_i32_22 : i32
    scf.if %37 {
      %38 = tpu.iota {dimensions = array<i32: 0>} : vector<8x1xi32>
      %c8_i32 = arith.constant 8 : i32
      %39 = arith.muli %arg0, %c8_i32 : i32
      %40 = vector.broadcast %39 : i32 to vector<8x1xi32>
      %41 = arith.addi %38, %40 : vector<8x1xi32>
      %c-100_i32 = arith.constant -100 : i32
      %42 = vector.broadcast %c-100_i32 : i32 to vector<8x1xi32>
      %43 = arith.cmpi ne, %4, %42 : vector<8x1xi32>
      %c16_i32 = arith.constant 16 : i32
      %44 = vector.broadcast %c16_i32 : i32 to vector<8x1xi32>
      %45 = arith.cmpi slt, %41, %44 : vector<8x1xi32>
      %46 = arith.andi %43, %45 : vector<8x1xi1>
      %c0_23 = arith.constant 0 : index
      %c0_24 = arith.constant 0 : index
      %47 = vector.load %arg7[%c0_23, %c0_24] : memref<8x1xf32, #tpu.memory_space<vmem>>, vector<8x1xf32>
      %48 = math.log %47 : vector<8x1xf32>
      %c0_25 = arith.constant 0 : index
      %c0_26 = arith.constant 0 : index
      %49 = vector.load %arg6[%c0_25, %c0_26] : memref<8x1xf32, #tpu.memory_space<vmem>>, vector<8x1xf32>
      %50 = arith.addf %48, %49 : vector<8x1xf32>
      %c0_27 = arith.constant 0 : index
      %c0_28 = arith.constant 0 : index
      %51 = vector.load %arg8[%c0_27, %c0_28] : memref<8x1xf32, #tpu.memory_space<vmem>>, vector<8x1xf32>
      %52 = arith.subf %50, %51 : vector<8x1xf32>
      %cst_29 = arith.constant 0.000000e+00 : f32
      %53 = vector.broadcast %cst_29 : f32 to vector<8x1xf32>
      %54 = arith.select %46, %52, %53 : vector<8x1xi1>, vector<8x1xf32>
      %55 = vector.shape_cast %54 : vector<8x1xf32> to vector<1x8x1xf32>
      %cst_30 = arith.constant dense<0.000000e+00> : vector<1xf32>
      %56 = vector.multi_reduction <add>, %55, %cst_30 [1, 2] : vector<1x8x1xf32> to vector<1xf32>
      %57 = vector.shape_cast %56 : vector<1xf32> to vector<1x1x1xf32>
      %58 = vector.extract %57[0, 0, 0] : f32 from vector<1x1x1xf32>
      %59 = vector.broadcast %58 : f32 to vector<1x1x128xf32>
      %c0_31 = arith.constant 0 : index
      %c0_32 = arith.constant 0 : index
      %c0_33 = arith.constant 0 : index
      %60 = vector.load %arg4[%c0_31, %c0_32, %c0_33] : memref<1x1x128xf32, #tpu.memory_space<vmem>>, vector<1x1x128xf32>
      tpu.vector_store %arg4[%c0_31, %c0_32, %c0_33], %59 {strides = array<i32>} : memref<1x1x128xf32, #tpu.memory_space<vmem>>, vector<1x1x128xf32>,
      %61 = arith.extui %46 : vector<8x1xi1> to vector<8x1xi32>
      %62 = arith.sitofp %61 : vector<8x1xi32> to vector<8x1xf32>
      %63 = vector.shape_cast %62 : vector<8x1xf32> to vector<1x8x1xf32>
      %cst_34 = arith.constant dense<0.000000e+00> : vector<1xf32>
      %64 = vector.multi_reduction <add>, %63, %cst_34 [1, 2] : vector<1x8x1xf32> to vector<1xf32>
      %65 = vector.shape_cast %64 : vector<1xf32> to vector<1x1x1xf32>
      %66 = vector.extract %65[0, 0, 0] : f32 from vector<1x1x1xf32>
      %67 = vector.broadcast %66 : f32 to vector<1x1x128xf32>
      %c0_35 = arith.constant 0 : index
      %c0_36 = arith.constant 0 : index
      %c0_37 = arith.constant 0 : index
      %68 = vector.load %arg5[%c0_35, %c0_36, %c0_37] : memref<1x1x128xf32, #tpu.memory_space<vmem>>, vector<1x1x128xf32>
      tpu.vector_store %arg5[%c0_35, %c0_36, %c0_37], %67 {strides = array<i32>} : memref<1x1x128xf32, #tpu.memory_space<vmem>>, vector<1x1x128xf32>,
    } else {
    }
    return
  }
  func.func @transform_0(%arg0: i32, %arg1: i32) -> (i32, i32) {
    %c0_i32 = arith.constant 0 : i32
    return %arg0, %arg1 : i32, i32
  }
  func.func @transform_1(%arg0: i32, %arg1: i32) -> (i32, i32) {
    %c0_i32 = arith.constant 0 : i32
    %c0_i32_0 = arith.constant 0 : i32
    return %arg0, %c0_i32 : i32, i32
  }
  func.func @transform_2(%arg0: i32, %arg1: i32) -> (i32, i32, i32) {
    %c0_i32 = arith.constant 0 : i32
    %c0_i32_0 = arith.constant 0 : i32
    %c0_i32_1 = arith.constant 0 : i32
    return %arg0, %c0_i32, %c0_i32_0 : i32, i32, i32
  }
  func.func @transform_3(%arg0: i32, %arg1: i32) -> (i32, i32, i32) {
    %c0_i32 = arith.constant 0 : i32
    %c0_i32_0 = arith.constant 0 : i32
    %c0_i32_1 = arith.constant 0 : i32
    return %arg0, %c0_i32, %c0_i32_0 : i32, i32, i32
  }
}

</mosaic_0001>

<bundles_post_ra>
// kernel: seq_loss.1
= control target key start
LH: loop header
LB: loop body
LE: loop exit
PB: predicated region body
PF: predicated region fallthrough
CT: control target
= control target key end

     0   :  { %s502_s12 = smov 0   ;;  %s504_s13 = smov 0   ;;  %s570_s0 = inlined_call_operand.vmem [shape: f32[16,32], index: 0, kind: input, shape index: {}]   ;;  %s571_s1 = inlined_call_operand.vmem [shape: s32[16,1], index: 1, kind: input, shape index: {}]   ;;  %s572_s2 = inlined_call_operand.vmem [shape: f32[2,1,128], index: 2, kind: output, shape index: {0}]   ;;  %s573_s3 = inlined_call_operand.vmem [shape: f32[2,1,128], index: 3, kind: output, shape index: {1}]  }
   0x1   :  { %s506_s14 = smov 0  }
   0x2 LB: > { %s26_s15 = sadd.s32 1, %s473_s13  ;;  %p409_p0 = scmp.ge.s32.totalorder %s477_s14, 1  ;;  %s477_s14 = sphi %s506_s14, %s14_s14   ;;  %s473_s13 = sphi %s504_s13, %s577_s13   ;;  %s469_s12 = sphi %s502_s12, %s576_s12  }
   0x3   : > { %p28_p1 = scmp.ge.s32.totalorder %s26_s15, 2  ;;  %p165_p2 = scmp.lt.s32.totalorder %s477_s14, 3 }
   0x5   : > { %s579_s15 = smov (%p28_p1, %s26_s15), 0  ;;  %p166_p3 = pnand %p409_p0, %p165_p2 }
   0x6   : > { %p196_p4 = scmp.lt.s32.totalorder (!%p166_p3), %s469_s12, 1  ;;  %vm217_vm0 = vcmask (!%p166_p3), 7168   ;;  %v479_v0 = vmov (!%p166_p3), -inf   ;;  %vm228_vm1 = vcmask (!%p166_p3), 261120   ;;  %v480_v3 = vmov (!%p166_p3), 0   ;;  %s412_s24 = sshll.u32 (!%p166_p3), %s469_s12, 3 }
   0x7   : > { %169 = sbr.rel (%p166_p3) target bundleno = 686 (0x2ae), region = 28  ;;  %218 = vst.msk [vmem:[#allocation2] sm:$0xff] (!%p166_p3), %vm217_vm0, %v479_v0  ;;  %447 = vset.pattern.permute.xlu0 (!%p166_p3), %v480_v3  ;;  %448 = vset.pattern.permute.xlu1 (!%p166_p3), %v480_v3  ;;  %v481_v5 = vmov (!%p166_p3), 0.0   ;;  %v223_v13 = vlaneseq (!%p166_p3)  ;;  %v271_v21 = vstv (!%p166_p3), %s412_s24 }
   0x8   : > { %219 = vst.msk [vmem:[#allocation3] sm:$0xff] (!%p166_p3), %vm217_vm0, %v481_v5  ;;  %220 = vst.msk [vmem:[#allocation4] sm:$0xff] (!%p166_p3), %vm217_vm0, %v481_v5 }
   0x9   : > { %v224_v14 = vand.u32 (!%p166_p3), 127, %v223_v13  ;;  %v269_v20 = vshrl.u32 (!%p166_p3), %v223_v13, 7 }
   0xb   : > { %v272_v22 = vadd.s32 (!%p166_p3), %v271_v21, %v269_v20 }
   0xd   : > { %vm274_vm4 = vcmp.lt.s32.totalorder (!%p166_p3), %v272_v22, 16 }
   0xe   : > { %s525_s16 = scalar_select %p196_p4, %s469_s12, 1  ;;  %v232_v6 = vld [vmem:[#allocation2] sm:$0xff] }
   0xf   : > { %v242_v28 = vld [vmem:[#allocation3] sm:$0xff]  ;;  %v259_v32 = vld [vmem:[#allocation4] sm:$0xff] }
  0x10   : > { %s410_s17 = sshll.u32 %s525_s16, 3  ;;  %s209_s27 = scalar_lea.vmem %s572_s2, %s525_s16 }
  0x11   : > { %s202_s20 = scalar_lea.vmem %s570_s0, %s410_s17  ;;  %s206_s23 = scalar_lea.vmem %s571_s1, %s410_s17 }
  0x12   : > { %v221_v1 = vld [vmem:[%s202_s20] sm:$0xff]  ;;  %s212_s4 = scalar_lea.vmem %s573_s3, %s525_s16 }
  0x13   : > { %v229_v2 = vsel %vm228_vm1, %v221_v1, -inf  ;;  %v222_v4 = vld [vmem:[%s206_s23] sm:$0xff] }
  0x14   : > { %230 = vmax.xlane.f32.xlu0 %v229_v2  ;;  %255 = vperm.xlu1 %448, %v222_v4   ;;  %vm273_vm3 = vcmp.ne.s32.totalorder %v222_v4, 4294967196 }
  0x15   : > { %vm541_vm5 = vmand %vm273_vm3, %vm274_vm4 }
  0x16   : > { %v413_v24 = vsel %vm541_vm5, 1.0, %v481_v5 }
  0x17   : > { %v298_v25 = vsel %vm217_vm0, %v413_v24, 0.0 }
  0x93   : > { %v256_v15 = vpop.permute.xlu1 %255 }
  0x94   : > { %vm257_vm2 = vcmp.eq.s32.totalorder %v224_v14, %v256_v15 }
  0x95   : > { %v258_v17 = vsel %vm257_vm2, %v221_v1, 0.0 }
  0x96   : > { %v260_v19 = vsel %vm228_vm1, %v258_v17, 0.0 }
  0xa1   : > { %v231_v7 = vpop.xlane.xlu0 %230 }
  0xa2   : > { %v233_v8 = vmax.f32 %v232_v6, %v231_v7 }
  0xa4   : > { %v243_v9 = vsub.f32 %v232_v6, %v233_v8  ;;  %253 = vst.msk [vmem:[#allocation2] sm:$0xff] %vm217_vm0, %v233_v8  ;;  %236 = vperm.xlu0 %447, %v233_v8  }
  0xa6   : > { %v244_v26 = vmul.f32 1.442695, %v243_v9 }
  0xab   : > { %v279_v38 = vld [vmem:[#allocation2] sm:$0xff] }
  0xc3   : > { %299 = vadd.xlane.f32.xlu0 %v298_v25 }
 0x123   : > { %v237_v10 = vpop.permute.xlu0 %236 }
 0x124   : > { %v239_v11 = vsub.f32 %v221_v1, %v237_v10 }
 0x126   : > { %v240_v12 = vmul.f32 1.442695, %v239_v11 }
 0x128   : > { %449 = vpow2.f32 %v240_v12 }
 0x129   : > { %451 = vpow2.f32 %v244_v26 }
 0x132   : > { %v450_v16 = vpop.eup %449 }
 0x133   : > { %v247_v18 = vsel %vm228_vm1, %v450_v16, 0.0  ;;  %v452_v27 = vpop.eup %451 }
 0x134   : > { %248 = vadd.xlane.f32.xlu1 %v247_v18  ;;  %v246_v29 = vmul.f32 %v452_v27, %v242_v28 }
 0x138   : > { %261 = vadd.xlane.f32.xlu1 %v260_v19 }
 0x150   : > { %v300_v44 = vpop.xlane.xlu0 %299 }
 0x151   : > { %v301_v45 = vrot.slane %v300_v44, 4 }
 0x153   : > { %v302_v46 = vadd.f32 %v301_v45, %v300_v44 }
 0x155   : > { %v303_v47 = vrot.slane %v302_v46, 2 }
 0x157   : > { %v304_v51 = vadd.f32 %v303_v47, %v302_v46 }
 0x159   : > { %v305_v54 = vrot.slane %v304_v51, 1 }
 0x15b   : > { %v306_v57 = vadd.f32 %v305_v54, %v304_v51 }
 0x1c1   : > { %v249_v30 = vpop.xlane.xlu1 %248 }
 0x1c2   : > { %v250_v31 = vadd.f32 %v249_v30, %v246_v29 }
 0x1c4   : > { %252 = vst.msk [vmem:[#allocation3] sm:$0xff] %vm217_vm0, %v250_v31 }
 0x1c5   : > { %v262_v33 = vpop.xlane.xlu1 %261 }
 0x1c6   : > { %v263_v34 = vadd.f32 %v262_v33, %v259_v32 }
 0x1c8   : > { %264 = vst.msk [vmem:[#allocation4] sm:$0xff] %vm217_vm0, %v263_v34 }
 0x1cb   : > { %v276_v35 = vld [vmem:[#allocation3] sm:$0xff] }
 0x1cc   : > { %453 = vlog2.f32 %v276_v35 }
 0x1cf   : > { %v281_v39 = vld [vmem:[#allocation4] sm:$0xff] }
 0x1d6   : > { %v454_v36 = vpop.eup %453 }
 0x1d7   : > { %v278_v37 = vmul.f32 0.6931472, %v454_v36 }
 0x1d9   : > { %v280_v40 = vadd.f32 %v279_v38, %v278_v37 }
 0x1db   : > { %v282_v41 = vsub.f32 %v280_v40, %v281_v39 }
 0x1dd   : > { %v283_v42 = vsel %vm541_vm5, %v282_v41, 0.0 }
 0x1de   : > { %v284_v43 = vsel %vm217_vm0, %v283_v42, 0.0 }
 0x1df   : > { %285 = vadd.xlane.f32.xlu1 %v284_v43 }
 0x26c   : > { %v286_v48 = vpop.xlane.xlu1 %285 }
 0x26d   : > { %v287_v49 = vrot.slane %v286_v48, 4 }
 0x26f   : > { %v288_v50 = vadd.f32 %v287_v49, %v286_v48 }
 0x271   : > { %v289_v52 = vrot.slane %v288_v50, 2 }
 0x273   : > { %v290_v53 = vadd.f32 %v289_v52, %v288_v50 }
 0x275   : > { %v291_v55 = vrot.slane %v290_v53, 1 }
 0x277   : > { %v292_v56 = vadd.f32 %v291_v55, %v290_v53 }
 0x279   : > { %416 = vpush %v292_v56 }
 0x27a   : > { %418 = vpush %v306_v57 }
 0x2aa   : > { %s417_s28 = spop %416 }
 0x2ab   : > { %v294_v58 = vstv %s417_s28  ;;  %s419_s5 = spop %418 }
 0x2ac   : > { %295 = vst [vmem:[%s209_s27] sm:$0x1] %v294_v58  ;;  %v308_v59 = vstv %s419_s5 }
 0x2ad   : > { %309 = vst [vmem:[%s212_s4] sm:$0x1] %v308_v59 }
 0x2ae PF: > { %s14_s14 = sadd.s32 1, %s477_s14   ;;  %s576_s12 = smov %s473_s13 }
 0x2af   : > { %p11_p5 = scmp.ge.s32.totalorder %s14_s14, 4   ;;  %s577_s13 = smov %s579_s15 }
 0x2b1   :  { %13 = sbr.rel (!%p11_p5) target bundleno = 2 (0x2), region = 81 }

</bundles_post_ra>
